<compile_context>
chip_gen: v6e
topology: v6e:2x2x1
jax: 0.10.0
libtpu: 0.0.40
codegen_flags: <defaults>
</compile_context>

<pallas_src>
import jax
import jax.numpy as jnp
from jax.experimental import pallas as pl
from jax.experimental.pallas import tpu as pltpu

_TARGET_BLOCK_BYTES = 8 * 1024 * 1024   # ~8 MiB blocks (amortize ~0.35 us/step vs v7x HBM BW)
_VMEM_LIMIT_BYTES = 48 * 1024 * 1024    # 2x(in+out) double-buffered 8 MiB blocks + headroom (<64 MiB)
_MIN_KERNEL_BYTES = 256 * 1024          # below this, launch overhead >> copy cost -> plain identity
_LANE_CANDIDATES = (8192, 4096, 2048, 1024, 512, 256, 128)


# ---------------------------------------------------------------------------
# Mode "alias": a Pallas op exists, but it moves ~zero bytes.
# ---------------------------------------------------------------------------
def _alias_noop_kernel(x_hbm_ref, o_hbm_ref):
    # input_output_aliases={0: 0} makes the output buffer *be* the (donated) input buffer,
    # and both refs live in HBM (memory_space=pl.ANY): the identity needs no data movement,
    # so the body is intentionally empty.
    del x_hbm_ref, o_hbm_ref


def _identity_alias(x):
    return pl.pallas_call(
        _alias_noop_kernel,
        out_shape=jax.ShapeDtypeStruct(x.shape, x.dtype),
        in_specs=[pl.BlockSpec(memory_space=pl.ANY)],
        out_specs=pl.BlockSpec(memory_space=pl.ANY),
        input_output_aliases={0: 0},
        cost_estimate=pl.CostEstimate(flops=0, transcendentals=0, bytes_accessed=0),
        compiler_params=pltpu.CompilerParams(has_side_effects=True),
    )(x)


# donate_argnums makes the alias real: no defensive copy of x in front of the call.
_identity_alias_jit = jax.jit(_identity_alias, donate_argnums=(0,))


# ---------------------------------------------------------------------------
# Mode "copy": identity materialized as a lane-dense, byte-sized-tiled copy.
# ---------------------------------------------------------------------------
def _copy_kernel(x_ref, o_ref):
    # Whole current tile: load from VMEM and store back out (identity).
    o_ref[...] = x_ref[...]


def _pick_lane(n):
    """Widest lane-dense width (multiple of 128) dividing the flat size, 0 if none."""
    for cand in _LANE_CANDIDATES:
        if n >= cand and n % cand == 0:
            return cand
    return 0


def _identity_copy(x):
    orig_shape = x.shape
    n = x.size
    lane = _pick_lane(n)
    if lane == 0:
        return x  # ragged size; the caller normally filters this already

    rows = n // lane
    x2 = x.reshape(rows, lane)  # contiguous reshape -> bitcast under jit (no copy)

    itemsize = jnp.dtype(x.dtype).itemsize
    # Sublane multiple for native tiling: 8 (f32), 16 (bf16), 32 (int8).
    sub = 8 * max(1, 4 // itemsize)
    target_rows = max(sub, (_TARGET_BLOCK_BYTES // (lane * itemsize)) // sub * sub)

    if rows <= target_rows:
        tile_rows = rows  # single full-extent block (always legal)
    else:
        tile_rows = target_rows
        # Prefer a tile height that divides rows (no masked tail block), but never shrink
        # below half the byte target; otherwise keep target_rows + masked trailing block.
        for d in range(target_rows, max(sub, target_rows // 2) - 1, -sub):
            if rows % d == 0:
                tile_rows = d
                break

    grid = (pl.cdiv(rows, tile_rows),)

    out = pl.pallas_call(
        _copy_kernel,
        out_shape=jax.ShapeDtypeStruct((rows, lane), x.dtype),
        grid_spec=pltpu.PrefetchScalarGridSpec(
            num_scalar_prefetch=0,
            grid=grid,
            in_specs=[pl.BlockSpec((tile_rows, lane), lambda i: (i, 0))],
            out_specs=pl.BlockSpec((tile_rows, lane), lambda i: (i, 0)),
        ),
        # Output aliases the (donated) input buffer: no extra HBM allocation for the result.
        input_output_aliases={0: 0},
        cost_estimate=pl.CostEstimate(flops=0, transcendentals=0,
                                      bytes_accessed=2 * n * itemsize),
        compiler_params=pltpu.CompilerParams(
            # Parallel grid axis: shards the DMA-bound copy across both TCs on v7x,
            # measured-neutral on single-TC v5e/v6e.
            dimension_semantics=("parallel",),
            vmem_limit_bytes=_VMEM_LIMIT_BYTES,
        ),
    )(x2)

    return out.reshape(orig_shape)


_identity_copy_jit = jax.jit(_identity_copy, donate_argnums=(0,))


def mindeye_forward(x: jax.Array, *, use_kernel: bool = False, mode: str = "alias",
                    min_kernel_bytes: int = _MIN_KERNEL_BYTES) -> jax.Array:
    """MindEyeModule.forward(x) = x.

    use_kernel=False (default) : return x directly — zero bytes moved (production path).
    use_kernel=True, mode="alias": no-op Pallas kernel over pl.ANY; output aliases the
                                   donated input buffer (~0 HBM bytes, launch overhead only).
    use_kernel=True, mode="copy" : lane-dense tiled Pallas copy (materialized identity).

    NOTE: the kernel paths donate x (jit donate_argnums); callers must not reuse x afterwards.
    """
    if not use_kernel:
        return x
    if x.size == 0:
        return x
    if mode == "alias":
        return _identity_alias_jit(x)
    if mode == "copy":
        itemsize = jnp.dtype(x.dtype).itemsize
        if x.size * itemsize < min_kernel_bytes or _pick_lane(x.size) == 0:
            # Tiny / ragged inputs: kernel overhead exceeds the copy; identity is exact.
            return x
        return _identity_copy_jit(x)
    raise ValueError(f"unknown mode: {mode!r}")


if __name__ == "__main__":
    shape, dtype = (2, 4, 16, 16), jnp.float32

    def make_x():
        # Deterministic input; regenerated because donated inputs are consumed by the kernel paths.
        return jax.random.normal(jax.random.PRNGKey(0), shape, dtype=dtype)

    x = make_x()
    x_expected = make_x()

    # 1) Recommended production path: pure identity, no kernel, no HBM traffic.
    y0 = mindeye_forward(x)
    assert y0 is x

    # 2) Aliased no-op Pallas kernel: output buffer is the donated input buffer (~0 bytes moved).
    y1 = jax.block_until_ready(mindeye_forward(make_x(), use_kernel=True, mode="alias"))
    assert y1.shape == shape and y1.dtype == dtype
    assert bool(jnp.all(y1 == x_expected))

    # 3) Lane-dense tiled copy kernel (forced past the small-input bailout for this tiny demo).
    y2 = jax.block_until_ready(mindeye_forward(make_x(), use_kernel=True, mode="copy",
                                               min_kernel_bytes=0))
    assert y2.shape == shape and y2.dtype == dtype
    assert bool(jnp.all(y2 == x_expected))

    print("KERNEL_OK")
</pallas_src>

<mosaic_0001>
module attributes {stable_mosaic.version = 11 : i64} {
  func.func @_alias_noop_kernel(%arg0: memref<2x4x16x16xf32, #tpu.memory_space<any>>, %arg1: memref<2x4x16x16xf32, #tpu.memory_space<any>>) attributes {dimension_semantics = [], scalar_prefetch = 0 : i64, scratch_operands = 0 : i64, tpu.core_type = #tpu.core_type<tc>} {
    return
  }
}

</mosaic_0001>

<bundles_post_ra>
// kernel: _identity_alias.1
= control target key start
LH: loop header
LB: loop body
LE: loop exit
PB: predicated region body
PF: predicated region fallthrough
CT: control target
= control target key end

     0   :  { %s16_s0 = inlined_call_operand.hbm [shape: f32[2,4,16,16], index: 0, kind: input, shape index: {}, may-alias: {0,1}]   ;;  %s17_s1 = inlined_call_operand.hbm [shape: f32[2,4,16,16], index: 1, kind: output, shape index: {}, may-alias: {0,1}]  }

</bundles_post_ra>
